<compile_context>
chip_gen: v6e
topology: v6e:2x2x1
jax: 0.10.0
libtpu: 0.0.40
codegen_flags: <defaults>
</compile_context>

<pallas_src>
import functools

import jax
import jax.numpy as jnp
import numpy as np
from jax import lax
from jax.experimental import pallas as pl
from jax.experimental.pallas import tpu as pltpu

EPS = 1e-5
_LANE = 128
# Conservative scoped-VMEM request: fits v7x's 64 MiB physical VMEM with room
# for double-buffered tiles; tile sizes below are chosen to stay well under it.
_VMEM_LIMIT_BYTES = 32 * 1024 * 1024


def _round_up(x, m):
    return (x + m - 1) // m * m


def _choose_row_tile(n_rows, n_cols, max_rows):
    """Largest row tile that divides n_rows, is a multiple of 8, respects a
    per-tile byte budget (so double-buffered in/out tiles stay well inside
    VMEM on v5e/v6e/v7x) and is <= max_rows."""
    budget_rows = max(8, (3 * 1024 * 1024) // (4 * n_cols))
    limit = min(n_rows, max_rows, budget_rows)
    limit -= limit % 8
    for t in range(limit, 7, -8):
        if n_rows % t == 0:
            return t
    return n_rows  # tiny / awkward row count: single full block


# --------------------------------------------------------------------------
# Kernels
# --------------------------------------------------------------------------
def _conv1_stats_kernel(x_ref, w1_ref, h1_ref, sum_ref, ssq_ref):
    """1x1 conv as a row-tiled matmul + per-tile partial BN statistics."""
    w1 = w1_ref[...]
    h = jnp.dot(x_ref[...].astype(w1.dtype), w1,
                preferred_element_type=jnp.float32)
    h1_ref[...] = h
    # one-pass stats: per-channel sum and sum of squares for this row tile
    sum_ref[0] = jnp.broadcast_to(jnp.sum(h, axis=0, keepdims=True),
                                  sum_ref.shape[1:])
    ssq_ref[0] = jnp.broadcast_to(jnp.sum(h * h, axis=0, keepdims=True),
                                  ssq_ref.shape[1:])


def _conv2_stats_kernel(H, W, PAD, h1_ref, sc1_ref, sh1_ref, w2_ref,
                        h2_ref, sum_ref, ssq_ref, a1_pad_ref):
    """bn1+relu, then the 3x3 conv as ONE fused im2col MXU matmul, plus
    per-image partial BN2 statistics. Processes one image (H*W rows)."""
    HW = H * W
    Pp = h1_ref.shape[-1]
    cdt = w2_ref.dtype

    # bn1/relu applied in f32, then cast once to the MXU operand dtype.
    a1 = jnp.maximum(h1_ref[0] * sc1_ref[...] + sh1_ref[...], 0.0).astype(cdt)

    # Halo-padded copy of a1 so every tap is a single contiguous (HW, Pp)
    # slice. Only the 2*PAD halo rows are zeroed (the masked selects below
    # never let halo values through; zeroing the whole scratch wastes stores).
    a1_pad_ref[0:PAD, :] = jnp.zeros((PAD, Pp), cdt)
    a1_pad_ref[PAD + HW:2 * PAD + HW, :] = jnp.zeros((PAD, Pp), cdt)
    a1_pad_ref[pl.ds(PAD, HW), :] = a1

    # Row / column validity masks, hoisted out of the tap loop.
    n_idx = lax.broadcasted_iota(jnp.int32, (HW, 1), 0)
    i_idx = n_idx // W
    j_idx = n_idx - i_idx * W
    row_ok = {-1: i_idx >= 1, 0: None, 1: i_idx <= H - 2}
    col_ok = {-1: j_idx >= 1, 0: None, 1: j_idx <= W - 2}

    taps = []
    for dh in (-1, 0, 1):
        for dw in (-1, 0, 1):
            shift = dh * W + dw                       # static flat shift
            tap = a1_pad_ref[pl.ds(PAD + shift, HW), :]
            mask = row_ok[dh]
            if col_ok[dw] is not None:
                mask = col_ok[dw] if mask is None else mask & col_ok[dw]
            if mask is not None:
                tap = jnp.where(mask, tap, jnp.zeros((), cdt))
            taps.append(tap)

    # One K = 9*Pp matmul instead of nine K = Pp matmuls.
    h2 = jnp.dot(jnp.concatenate(taps, axis=-1), w2_ref[...],
                 preferred_element_type=jnp.float32)
    h2_ref[0] = h2
    sum_ref[0] = jnp.broadcast_to(jnp.sum(h2, axis=0, keepdims=True),
                                  sum_ref.shape[1:])
    ssq_ref[0] = jnp.broadcast_to(jnp.sum(h2 * h2, axis=0, keepdims=True),
                                  ssq_ref.shape[1:])


def _conv3_stats_kernel(h2_ref, sc2_ref, sh2_ref, w3_ref,
                        h3_ref, sum_ref, ssq_ref):
    """bn2+relu then 1x1 conv (row-tiled matmul) + partial BN3 statistics."""
    a2 = jnp.maximum(h2_ref[...] * sc2_ref[...] + sh2_ref[...], 0.0)   # f32
    w3 = w3_ref[...]
    h3 = jnp.dot(a2.astype(w3.dtype), w3, preferred_element_type=jnp.float32)
    h3_ref[...] = h3
    sum_ref[0] = jnp.broadcast_to(jnp.sum(h3, axis=0, keepdims=True),
                                  sum_ref.shape[1:])
    ssq_ref[0] = jnp.broadcast_to(jnp.sum(h3 * h3, axis=0, keepdims=True),
                                  ssq_ref.shape[1:])


def _bn3_residual_kernel(h3_ref, x_ref, sc3_ref, sh3_ref, out_ref):
    """bn3 + identity residual + relu (all f32)."""
    out_ref[...] = jnp.maximum(
        h3_ref[...] * sc3_ref[...] + sh3_ref[...] + x_ref[...], 0.0)


# --------------------------------------------------------------------------
# Wrapper
# --------------------------------------------------------------------------
def _finalize_bn(sum_part, ssq_part, gamma, beta, count):
    """Fold training-mode BN (biased batch stats) into per-channel
    scale/shift: y = x*scale + shift, from per-tile partial sums."""
    total = jnp.sum(sum_part[:, 0, :], axis=0)
    total_sq = jnp.sum(ssq_part[:, 0, :], axis=0)
    mean = total / count
    var = jnp.maximum(total_sq / count - mean * mean, 0.0)
    scale = gamma * lax.rsqrt(var + EPS)
    shift = beta - mean * scale
    return scale.reshape(1, -1), shift.reshape(1, -1)


def bottleneck_pallas(x_nchw, params, *, compute_dtype=jnp.float32,
                      max_tile_rows=1024):
    """Forward pass of the PyTorch Bottleneck (training-mode BN, stride=1,
    downsample=None). params holds PyTorch-layout weights (OIHW) + BN g/b."""
    B, Cin, H, W = x_nchw.shape
    P = params["w1"].shape[0]
    Cout = 4 * P
    assert Cin == Cout, "identity residual requires inplanes == 4*planes"

    cdt = compute_dtype
    Pp = _round_up(P, _LANE)      # lane-dense bottleneck channel dim
    Cp = _round_up(Cin, _LANE)    # lane-dense input/output channel dim
    HW = H * W
    N = B * HW
    PAD = _round_up(W + 1, 8)     # halo rows for the 3x3 taps (>= W+1, 8-aligned)
    assert PAD >= W + 1 and PAD % 8 == 0

    # ---- parameters to kernel layout (channels padded to lane multiples) ----
    w1 = jnp.zeros((Cp, Pp), cdt).at[:Cin, :P].set(
        params["w1"][:, :, 0, 0].T.astype(cdt))
    w2 = jnp.zeros((3, 3, Pp, Pp), cdt).at[:, :, :P, :P].set(
        jnp.transpose(params["w2"], (2, 3, 1, 0)).astype(cdt))
    w2 = w2.reshape(9 * Pp, Pp)                    # row block k = kh*3 + kw
    w3 = jnp.zeros((Pp, Cp), cdt).at[:P, :Cout].set(
        params["w3"][:, :, 0, 0].T.astype(cdt))

    def pad_vec(v, c):
        return jnp.zeros((c,), jnp.float32).at[:v.shape[0]].set(
            v.astype(jnp.float32))

    g1, b1 = pad_vec(params["g1"], Pp), pad_vec(params["b1"], Pp)
    g2, b2 = pad_vec(params["g2"], Pp), pad_vec(params["b2"], Pp)
    g3, b3 = pad_vec(params["g3"], Cp), pad_vec(params["b3"], Cp)

    # ---- input to channels-last, row-flattened, channel-padded layout ----
    x_rows = jnp.transpose(x_nchw.astype(jnp.float32),
                           (0, 2, 3, 1)).reshape(N, Cin)
    x2d = jnp.zeros((N, Cp), jnp.float32).at[:, :Cin].set(x_rows)

    tile_n = _choose_row_tile(N, max(Cp, Pp), max_tile_rows)
    nt = N // tile_n
    cparams = pltpu.CompilerParams(dimension_semantics=("parallel",),
                                   vmem_limit_bytes=_VMEM_LIMIT_BYTES)

    # -------- pass 1: conv1 (1x1) + partial BN1 statistics ----------------
    h1, s1, q1 = pl.pallas_call(
        _conv1_stats_kernel,
        grid=(nt,),
        in_specs=[pl.BlockSpec((tile_n, Cp), lambda i: (i, 0)),
                  pl.BlockSpec((Cp, Pp), lambda i: (0, 0))],
        out_specs=[pl.BlockSpec((tile_n, Pp), lambda i: (i, 0)),
                   pl.BlockSpec((1, 8, Pp), lambda i: (i, 0, 0)),
                   pl.BlockSpec((1, 8, Pp), lambda i: (i, 0, 0))],
        out_shape=[jax.ShapeDtypeStruct((N, Pp), jnp.float32),
                   jax.ShapeDtypeStruct((nt, 8, Pp), jnp.float32),
                   jax.ShapeDtypeStruct((nt, 8, Pp), jnp.float32)],
        compiler_params=cparams,
    )(x2d, w1)
    sc1, sh1 = _finalize_bn(s1, q1, g1, b1, N)

    # -------- pass 2: bn1+relu, 3x3 conv (fused im2col matmul), stats2 ----
    h2, s2, q2 = pl.pallas_call(
        functools.partial(_conv2_stats_kernel, H, W, PAD),
        grid=(B,),
        in_specs=[pl.BlockSpec((1, HW, Pp), lambda b: (b, 0, 0)),
                  pl.BlockSpec((1, Pp), lambda b: (0, 0)),
                  pl.BlockSpec((1, Pp), lambda b: (0, 0)),
                  pl.BlockSpec((9 * Pp, Pp), lambda b: (0, 0))],
        out_specs=[pl.BlockSpec((1, HW, Pp), lambda b: (b, 0, 0)),
                   pl.BlockSpec((1, 8, Pp), lambda b: (b, 0, 0)),
                   pl.BlockSpec((1, 8, Pp), lambda b: (b, 0, 0))],
        out_shape=[jax.ShapeDtypeStruct((B, HW, Pp), jnp.float32),
                   jax.ShapeDtypeStruct((B, 8, Pp), jnp.float32),
                   jax.ShapeDtypeStruct((B, 8, Pp), jnp.float32)],
        scratch_shapes=[pltpu.VMEM((2 * PAD + HW, Pp), cdt)],
        compiler_params=cparams,
    )(h1.reshape(B, HW, Pp), sc1, sh1, w2)
    sc2, sh2 = _finalize_bn(s2, q2, g2, b2, N)

    # -------- pass 3: bn2+relu, conv3 (1x1), stats3 ------------------------
    h3, s3, q3 = pl.pallas_call(
        _conv3_stats_kernel,
        grid=(nt,),
        in_specs=[pl.BlockSpec((tile_n, Pp), lambda i: (i, 0)),
                  pl.BlockSpec((1, Pp), lambda i: (0, 0)),
                  pl.BlockSpec((1, Pp), lambda i: (0, 0)),
                  pl.BlockSpec((Pp, Cp), lambda i: (0, 0))],
        out_specs=[pl.BlockSpec((tile_n, Cp), lambda i: (i, 0)),
                   pl.BlockSpec((1, 8, Cp), lambda i: (i, 0, 0)),
                   pl.BlockSpec((1, 8, Cp), lambda i: (i, 0, 0))],
        out_shape=[jax.ShapeDtypeStruct((N, Cp), jnp.float32),
                   jax.ShapeDtypeStruct((nt, 8, Cp), jnp.float32),
                   jax.ShapeDtypeStruct((nt, 8, Cp), jnp.float32)],
        compiler_params=cparams,
    )(h2.reshape(N, Pp), sc2, sh2, w3)
    sc3, sh3 = _finalize_bn(s3, q3, g3, b3, N)

    # -------- pass 4: bn3 + identity residual + relu -----------------------
    out2d = pl.pallas_call(
        _bn3_residual_kernel,
        grid=(nt,),
        in_specs=[pl.BlockSpec((tile_n, Cp), lambda i: (i, 0)),
                  pl.BlockSpec((tile_n, Cp), lambda i: (i, 0)),
                  pl.BlockSpec((1, Cp), lambda i: (0, 0)),
                  pl.BlockSpec((1, Cp), lambda i: (0, 0))],
        out_specs=pl.BlockSpec((tile_n, Cp), lambda i: (i, 0)),
        out_shape=jax.ShapeDtypeStruct((N, Cp), jnp.float32),
        compiler_params=cparams,
    )(h3, x2d, sc3, sh3)

    out = out2d.reshape(B, H, W, Cp)[:, :, :, :Cout]
    return jnp.transpose(out, (0, 3, 1, 2))


# --------------------------------------------------------------------------
# Pure-JAX reference replicating the PyTorch forward (NCHW, training BN)
# --------------------------------------------------------------------------
def bottleneck_ref(x, p):
    def bn(h, g, b):
        mean = jnp.mean(h, axis=(0, 2, 3), keepdims=True)
        var = jnp.mean((h - mean) ** 2, axis=(0, 2, 3), keepdims=True)
        return ((h - mean) * lax.rsqrt(var + EPS) * g.reshape(1, -1, 1, 1)
                + b.reshape(1, -1, 1, 1))

    dn = ("NCHW", "OIHW", "NCHW")
    out = lax.conv_general_dilated(x, p["w1"], (1, 1), "VALID",
                                   dimension_numbers=dn)
    out = jnp.maximum(bn(out, p["g1"], p["b1"]), 0.0)
    out = lax.conv_general_dilated(out, p["w2"], (1, 1), ((1, 1), (1, 1)),
                                   dimension_numbers=dn)
    out = jnp.maximum(bn(out, p["g2"], p["b2"]), 0.0)
    out = lax.conv_general_dilated(out, p["w3"], (1, 1), "VALID",
                                   dimension_numbers=dn)
    out = bn(out, p["g3"], p["b3"])
    return jnp.maximum(out + x, 0.0)


if __name__ == "__main__":
    # Small shapes consistent with the module: inplanes == 4 * planes so the
    # identity residual is valid (stride=1, downsample=None).
    B, planes, H, W = 2, 4, 16, 16
    inplanes = 4 * planes

    keys = jax.random.split(jax.random.PRNGKey(0), 10)
    x = jax.random.normal(keys[0], (B, inplanes, H, W), jnp.float32)

    params = dict(
        w1=0.2 * jax.random.normal(keys[1], (planes, inplanes, 1, 1), jnp.float32),
        w2=0.2 * jax.random.normal(keys[2], (planes, planes, 3, 3), jnp.float32),
        w3=0.2 * jax.random.normal(keys[3], (planes * 4, planes, 1, 1), jnp.float32),
        g1=1.0 + 0.1 * jax.random.normal(keys[4], (planes,), jnp.float32),
        b1=0.1 * jax.random.normal(keys[5], (planes,), jnp.float32),
        g2=1.0 + 0.1 * jax.random.normal(keys[6], (planes,), jnp.float32),
        b2=0.1 * jax.random.normal(keys[7], (planes,), jnp.float32),
        g3=1.0 + 0.1 * jax.random.normal(keys[8], (planes * 4,), jnp.float32),
        b3=0.1 * jax.random.normal(keys[9], (planes * 4,), jnp.float32),
    )

    ref = jax.block_until_ready(bottleneck_ref(x, params))

    # f32 MXU-operand path: faithful to the f32 PyTorch semantics.
    # (max_tile_rows=128 forces a multi-tile grid so the pipelining path is
    # exercised even at this toy size.)
    out_f32 = jax.block_until_ready(
        bottleneck_pallas(x, params, compute_dtype=jnp.float32,
                          max_tile_rows=128))
    np.testing.assert_allclose(np.asarray(out_f32), np.asarray(ref),
                               rtol=2e-3, atol=2e-3)

    # bf16 MXU-operand path (recommended on v6e/v7x): BN/ReLU/residual stay
    # f32; verify with a relative-error bound appropriate for bf16 operands.
    out_bf16 = jax.block_until_ready(
        bottleneck_pallas(x, params, compute_dtype=jnp.bfloat16,
                          max_tile_rows=128))
    rel = (np.linalg.norm(np.asarray(out_bf16) - np.asarray(ref))
           / np.linalg.norm(np.asarray(ref)))
    assert rel < 0.08, f"bf16 path relative error too high: {rel}"

    print("KERNEL_OK")
</pallas_src>

<mosaic_0001>
module attributes {stable_mosaic.version = 11 : i64} {
  func.func @_conv1_stats_kernel(%arg0: i32, %arg1: memref<128x128xf32, #tpu.memory_space<vmem>>, %arg2: memref<128x128xf32, #tpu.memory_space<vmem>>, %arg3: memref<128x128xf32, #tpu.memory_space<vmem>>, %arg4: memref<1x8x128xf32, #tpu.memory_space<vmem>>, %arg5: memref<1x8x128xf32, #tpu.memory_space<vmem>>) attributes {dimension_semantics = [#tpu.dimension_semantics<parallel>], iteration_bounds = array<i64: 4>, scalar_prefetch = 0 : i64, scratch_operands = 0 : i64, tpu.core_type = #tpu.core_type<tc>, window_params = [{transform_indices = @transform_0, window_bounds = array<i64: 128, 128>}, {pipeline_mode = #tpu.pipeline_mode<synchronous>, transform_indices = @transform_1, window_bounds = array<i64: 128, 128>}, {transform_indices = @transform_2, window_bounds = array<i64: 128, 128>}, {transform_indices = @transform_3, window_bounds = array<i64: 1, 8, 128>}, {transform_indices = @transform_4, window_bounds = array<i64: 1, 8, 128>}]} {
    %c0 = arith.constant 0 : index
    %c0_0 = arith.constant 0 : index
    %0 = vector.load %arg2[%c0, %c0_0] : memref<128x128xf32, #tpu.memory_space<vmem>>, vector<128x128xf32>
    %c0_1 = arith.constant 0 : index
    %c0_2 = arith.constant 0 : index
    %1 = vector.load %arg1[%c0_1, %c0_2] : memref<128x128xf32, #tpu.memory_space<vmem>>, vector<128x128xf32>
    %cst = arith.constant dense<0.000000e+00> : vector<128x128xf32>
    %2 = tpu.matmul %1, %0, %cst {dimension_numbers = #tpu.dot_dimension_numbers<[1], [0], [0], [1], [0, 0, 1, 1], [], []>} : vector<128x128xf32>, vector<128x128xf32>, vector<128x128xf32> -> vector<128x128xf32>
    %c0_3 = arith.constant 0 : index
    %c0_4 = arith.constant 0 : index
    %3 = vector.load %arg3[%c0_3, %c0_4] : memref<128x128xf32, #tpu.memory_space<vmem>>, vector<128x128xf32>
    tpu.vector_store %arg3[%c0_3, %c0_4], %2 {strides = array<i32>} : memref<128x128xf32, #tpu.memory_space<vmem>>, vector<128x128xf32>,
    %cst_5 = arith.constant dense<0.000000e+00> : vector<128xf32>
    %4 = vector.multi_reduction <add>, %2, %cst_5 [0] : vector<128x128xf32> to vector<128xf32>
    %5 = vector.shape_cast %4 : vector<128xf32> to vector<1x128xf32>
    %6 = vector.shape_cast %5 : vector<1x128xf32> to vector<1x128xf32>
    %7 = vector.broadcast %6 : vector<1x128xf32> to vector<8x128xf32>
    %c0_6 = arith.constant 0 : index
    %c0_7 = arith.constant 0 : index
    %c0_8 = arith.constant 0 : index
    %8 = vector.load %arg4[%c0_6, %c0_7, %c0_8] : memref<1x8x128xf32, #tpu.memory_space<vmem>>, vector<1x8x128xf32>
    %9 = vector.shape_cast %8 : vector<1x8x128xf32> to vector<8x128xf32>
    %10 = vector.shape_cast %7 : vector<8x128xf32> to vector<1x8x128xf32>
    tpu.vector_store %arg4[%c0_6, %c0_7, %c0_8], %10 {strides = array<i32>} : memref<1x8x128xf32, #tpu.memory_space<vmem>>, vector<1x8x128xf32>,
    %11 = arith.mulf %2, %2 : vector<128x128xf32>
    %cst_9 = arith.constant dense<0.000000e+00> : vector<128xf32>
    %12 = vector.multi_reduction <add>, %11, %cst_9 [0] : vector<128x128xf32> to vector<128xf32>
    %13 = vector.shape_cast %12 : vector<128xf32> to vector<1x128xf32>
    %14 = vector.shape_cast %13 : vector<1x128xf32> to vector<1x128xf32>
    %15 = vector.broadcast %14 : vector<1x128xf32> to vector<8x128xf32>
    %c0_10 = arith.constant 0 : index
    %c0_11 = arith.constant 0 : index
    %c0_12 = arith.constant 0 : index
    %16 = vector.load %arg5[%c0_10, %c0_11, %c0_12] : memref<1x8x128xf32, #tpu.memory_space<vmem>>, vector<1x8x128xf32>
    %17 = vector.shape_cast %16 : vector<1x8x128xf32> to vector<8x128xf32>
    %18 = vector.shape_cast %15 : vector<8x128xf32> to vector<1x8x128xf32>
    tpu.vector_store %arg5[%c0_10, %c0_11, %c0_12], %18 {strides = array<i32>} : memref<1x8x128xf32, #tpu.memory_space<vmem>>, vector<1x8x128xf32>,
    return
  }
  func.func @transform_0(%arg0: i32) -> (i32, i32) {
    %c0_i32 = arith.constant 0 : i32
    %c0_i32_0 = arith.constant 0 : i32
    return %arg0, %c0_i32 : i32, i32
  }
  func.func @transform_1(%arg0: i32) -> (i32, i32) {
    %c0_i32 = arith.constant 0 : i32
    %c0_i32_0 = arith.constant 0 : i32
    %c0_i32_1 = arith.constant 0 : i32
    return %c0_i32, %c0_i32_0 : i32, i32
  }
  func.func @transform_2(%arg0: i32) -> (i32, i32) {
    %c0_i32 = arith.constant 0 : i32
    %c0_i32_0 = arith.constant 0 : i32
    return %arg0, %c0_i32 : i32, i32
  }
  func.func @transform_3(%arg0: i32) -> (i32, i32, i32) {
    %c0_i32 = arith.constant 0 : i32
    %c0_i32_0 = arith.constant 0 : i32
    %c0_i32_1 = arith.constant 0 : i32
    return %arg0, %c0_i32, %c0_i32_0 : i32, i32, i32
  }
  func.func @transform_4(%arg0: i32) -> (i32, i32, i32) {
    %c0_i32 = arith.constant 0 : i32
    %c0_i32_0 = arith.constant 0 : i32
    %c0_i32_1 = arith.constant 0 : i32
    return %arg0, %c0_i32, %c0_i32_0 : i32, i32, i32
  }
}

</mosaic_0001>

<bundles_post_ra>
// kernel: tpu_custom_call.1
= control target key start
LH: loop header
LB: loop body
LE: loop exit
PB: predicated region body
PF: predicated region fallthrough
CT: control target
= control target key end

     0   :  { %10 = vsyncpa [#allocation3], 0  ;;  %s1448_s0 = inlined_call_operand.hbm [shape: f32[512,128], index: 0, kind: input, shape index: {}]   ;;  %s1449_s1 = inlined_call_operand.hbm [shape: f32[128,128], index: 1, kind: input, shape index: {}]   ;;  %s1450_s2 = inlined_call_operand.hbm [shape: f32[512,128], index: 2, kind: output, shape index: {0}]   ;;  %s1451_s3 = inlined_call_operand.hbm [shape: f32[4,8,128], index: 3, kind: output, shape index: {1}]   ;;  %s1452_s4 = inlined_call_operand.hbm [shape: f32[4,8,128], index: 4, kind: output, shape index: {2}]  }
   0x1   :  { %12 = vsyncpa [#allocation3 + $0x1], 0 }
   0x2   :  { %13 = vsyncpa [#allocation6], 0 }
   0x3   :  { %14 = vsyncpa [#allocation4], 0 }
   0x4   :  { %16 = vsyncpa [#allocation4 + $0x1], 0 }
   0x5   :  { %17 = vsyncpa [#allocation9], 0 }
   0x6   :  { %19 = vsyncpa [#allocation9 + $0x1], 0  ;;  %s1127_s15 = smov 0   ;;  %s1129_s16 = smov 0  }
   0x7   :  { %s1131_s17 = smov 0   ;;  %s1133_s18 = smov 0  }
   0x8 LB: > { %s1148_s19 = sadd.s32 4294967295, %s1091_s18   ;;  %s1454_s20 = sadd.s32 4294967294, %s1091_s18   ;;  %s1091_s18 = sphi %s1133_s18, %s1475_s18   ;;  %s1087_s17 = sphi %s1131_s17, %s1474_s17   ;;  %s1083_s16 = sphi %s1129_s16, %s1473_s16   ;;  %s1079_s15 = sphi %s1127_s15, %s1472_s15  }
   0x9   : > { %p45_p0 = scmp.ne.s32.totalorder %s1083_s16, %s1079_s15  ;;  %p1453_p1 = scmp.eq.s32.totalorder %s1148_s19, 0 }
   0xa   : > { %p96_p3 = scmp.eq.s32.totalorder %s1454_s20, 3  ;;  %p699_p5 = scmp.ge.s32.totalorder %s1091_s18, 1 }
   0xb   : > { %p1159_p4 = por %p1453_p1, %p45_p0  ;;  %p155_p7 = scmp.lt.s32.totalorder %s1091_s18, 5 }
   0xc   : > { %p1164_p6 = por %p96_p3, %p45_p0  ;;  %s1093_s24 = smov [#allocation5]  }
   0xd   : > { %s1458_s21 = scalar_select %p1159_p4, 1, 0 }
   0xe   : > { %s1459_s22 = scalar_select %p1164_p6, 1, 0 }
   0xf   : > { %p1169_p8 = pnand %p699_p5, %p155_p7  ;;  %s167_s25 = sshll.u32 %s1093_s24, 4  ;;  %s168_s25 = int_to_ptr.vmem [resolvable:$true] %s167_s25 }
  0x10   : > { %s1182_s27 = sadd.s32 1, %s1091_s18   ;;  %s32_s28 = sadd.s32 1, %s1087_s17 }
  0x11   : > { %s1460_s23 = scalar_select %p1169_p8, 1, 0 }
  0x12   : > { %p854_p9 = pneg %p1169_p8  ;;  %s29_s29 = ssub.s32 %s1091_s18, %s1182_s27 }
  0x13   : > { %s924_s30 = scalar_lea.vmem %s168_s25, 2048  ;;  %p932_p3 = scmp.lt.s32.totalorder %s168_s25, %s168_s25 }
  0x14   : > { %p1177_p10 = pnand %p854_p9, %p1453_p1  ;;  %p925_p12 = scmp.ne.s32.totalorder %s168_s25, %s924_s30 }
  0x15   : > { %p933_p5 = scmp.lt.s32.totalorder %s924_s30, %s924_s30 }
  0x16   : > { %p915_p11 = pneg %p1177_p10 }
  0x17   : > { %p934_p7 = por %p933_p5, %p932_p3 }
  0x18   : > { %p927_p13 = pnand %p925_p12, %p915_p11 }
  0x1a   : > { %p928_p0 = pneg %p927_p13 }
  0x1c   : > { %p935_p2 = pnand %p934_p7, %p928_p0 }
  0x1e   : > { %938 = shalt.err (!%p935_p2)
}
  0x1f   : > { %s1094_s5 = smov 128   ;;  %s1095_s6 = smov 8  }
  0x20   : > { %857 = dma.hbm_to_vmem [thread:$0]  (!%p1177_p10), %s1449_s1, 2048, %s168_s25, [#allocation6], %s1094_s5, %s1094_s5, %s1095_s6  }
  0x21   : > { %p30_p2 = scmp.eq.s32.totalorder %s29_s29, 0  ;;  %p39_p9 = scmp.ne.s32.totalorder %s1087_s17, %s1083_s16 }
  0x22   : > { %p40_p11 = scmp.eq.s32.totalorder %s1091_s18, 0  ;;  %p873_p12 = scmp.lt.s32.totalorder %s1091_s18, 4 }
  0x23   : > { %s1202_s9 = scalar_select %p30_p2, %s1087_s17, %s32_s28  }
  0x24   : > { %p41_p13 = por %p40_p11, %p39_p9  ;;  %p1462_p0 = scmp.eq.s32.totalorder %s1148_s19, 3 }
  0x25   : > { %s181_s11 = sand.u32 1, %s1087_s17   ;;  %s720_s12 = sshll.u32 %s1091_s18, 11 }
  0x26   : > { %p1206_p3 = por %p1462_p0, %p39_p9  ;;  %s702_s13 = sshll.u32 %s181_s11, 7 }
  0x27   : > { %s1215_s26 = scalar_lea.hbm %s1448_s0, %s720_s12  ;;  %s185_s25 = scalar_lea.vmem [#allocation2], %s702_s13 }
  0x28   : > { %s1463_s10 = scalar_select %p1206_p3, 1, 0 }
  0x29   : > { %s192_s28 = sshll.u32 %s185_s25, 4  ;;  %p1217_p10 = pnand %p873_p12, %p41_p13  ;;  %s1221_s28 = int_to_ptr.vmem [resolvable:$true] %s192_s28 }
  0x2a   : > { %s1223_s30 = scalar_lea.sflag [#allocation3], %s181_s11  ;;  %s939_s7 = scalar_lea.hbm %s1215_s26, 2048 }
  0x2b   : > { %p940_p5 = scmp.ne.s32.totalorder %s1215_s26, %s939_s7  ;;  %p941_p7 = pneg %p1217_p10 }
  0x2c   : > { %s944_s13 = scalar_lea.hbm %s1448_s0, 8192  ;;  %p945_p11 = scmp.lt.s32.totalorder %s1215_s26, %s1448_s0 }
  0x2d   : > { %p942_p2 = pnand %p941_p7, %p940_p5  ;;  %p946_p12 = scmp.lt.s32.totalorder %s944_s13, %s939_s7 }
  0x2f   : > { %p943_p9 = pneg %p942_p2  ;;  %p947_p13 = por %p946_p12, %p945_p11 }
  0x31   : > { %p948_p0 = pnand %p947_p13, %p943_p9 }
  0x33   : > { %951 = shalt.err (!%p948_p0)
}
  0x34   : > { %s952_s11 = scalar_lea.vmem %s1221_s28, 2048  ;;  %s1096_s25 = smov [#allocation2]  }
  0x35   : > { %p953_p1 = scmp.ne.s32.totalorder %s1221_s28, %s952_s11  ;;  %s957_s20 = sshll.u32 %s1096_s25, 4  ;;  %s958_s20 = int_to_ptr.vmem [resolvable:$false] %s957_s20 }
  0x36   : > { %s959_s8 = scalar_lea.vmem %s958_s20, 4096  ;;  %p960_p2 = scmp.lt.s32.totalorder %s1221_s28, %s958_s20 }
  0x37   : > { %p955_p6 = pnand %p953_p1, %p941_p7  ;;  %p961_p3 = scmp.lt.s32.totalorder %s959_s8, %s952_s11 }
  0x39   : > { %p956_p5 = pneg %p955_p6  ;;  %p962_p4 = por %p961_p3, %p960_p2 }
  0x3b   : > { %p963_p8 = pnand %p962_p4, %p956_p5 }
  0x3d   : > { %966 = shalt.err (!%p963_p8)
}
  0x3e   : > { %861 = dma.hbm_to_vmem [thread:$0]  (!%p1217_p10), %s1215_s26, 2048, %s1221_s28, %s1223_s30, %s1094_s5, %s1094_s5, %s1095_s6  }
  0x3f   : > { %p1465_p1 = scmp.ne.s32.totalorder %s1460_s23, 0 }
  0x40   : > { %s1250_s7 = sand.u32 (!%p1465_p1), 1, %s1083_s16   ;;  %p1466_p4 = scmp.ne.s32.totalorder (!%p1465_p1), %s1458_s21, 0 }
  0x41   : > { %204 = sbr.rel (%p1465_p1) target bundleno = 390 (0x186), region = 28  ;;  %s706_s20 = sshll.u32 (!%p1465_p1), %s1250_s7, 7 }
  0x42   : > { %s207_s12 = scalar_lea.sflag (!%p1465_p1), [#allocation3], %s1250_s7  ;;  %s1256_s29 = scalar_lea.vmem (!%p1465_p1), [#allocation2], %s706_s20 }
  0x46   : > { %1062 = dma.done.wait (%p1466_p4), %s207_s12, 2048  }
  0x47   : > { %1064 = vsyncadd (%p1466_p4), %s207_s12, 4294965248  ;;  %p1467_p6 = scmp.eq.s32.totalorder %s1148_s19, 0 }
  0x49   : > { %1066 = dma.done.wait (%p1467_p6), [#allocation6], 2048   ;;  %p1468_p8 = pmov %p1467_p6 }
  0x4a   : > { %v266_v0 = vld [vmem:[#allocation5 + $0x78] sm:$0xff]  ;;  %v265_v1 = vld [vmem:[#allocation5 + $0x70] sm:$0xff]  ;;  %v264_v2 = vld [vmem:[#allocation5 + $0x68] sm:$0xff]  ;;  %s1284_s21 = scalar_lea.vmem [#allocation7], %s706_s20  ;;  %s721_s23 = sshll.u32 %s1148_s19, 11 }
  0x4b   : > { %1068 = vsyncadd (%p1468_p8), [#allocation6], 4294965248  ;;  %754 = vmatprep.subr.mxu0 %v266_v0  ;;  %810 = vmatprep.subr.mxu1 %v266_v0  ;;  %v263_v3 = vld [vmem:[#allocation5 + $0x60] sm:$0xff]  ;;  %v262_v4 = vld [vmem:[#allocation5 + $0x58] sm:$0xff]  ;;  %s528_s5 = sshll.u32 %s1284_s21, 4  ;;  %s1319_s28 = scalar_lea.hbm %s1450_s2, %s721_s23  ;;  %s1321_s5 = int_to_ptr.vmem [resolvable:$true] %s528_s5 }
  0x4c   : > { %755 = vmatpush3.msra.mxu0 %v266_v0  ;;  %826 = vmatpush3.msra.mxu1 %v266_v0  ;;  %v261_v5 = vld [vmem:[#allocation5 + $0x50] sm:$0xff]  ;;  %v260_v6 = vld [vmem:[#allocation5 + $0x48] sm:$0xff]  ;;  %v259_v7 = vld [vmem:[#allocation5 + $0x40] sm:$0xff]  ;;  %s505_s30 = scalar_lea.sflag [#allocation4], %s1250_s7  ;;  %s967_s13 = scalar_lea.vmem %s1321_s5, 2048 }
  0x4d   : > { %756 = vmatprep.subr.mxu0 %v265_v1  ;;  %811 = vmatprep.subr.mxu1 %v265_v1  ;;  %v258_v8 = vld [vmem:[#allocation5 + $0x38] sm:$0xff]  ;;  %v257_v9 = vld [vmem:[#allocation5 + $0x30] sm:$0xff]  ;;  %v267_v10 = vld [vmem:[%s1256_s29] sm:$0xff]  ;;  %p968_p3 = scmp.ne.s32.totalorder %s1321_s5, %s967_s13  ;;  %p1469_p10 = scmp.ne.s32.totalorder %s1463_s10, 0 }
  0x4e   : > { %757 = vmatpush3.msra.mxu0 %v265_v1  ;;  %827 = vmatpush3.msra.mxu1 %v265_v1  ;;  %v256_v11 = vld [vmem:[#allocation5 + $0x28] sm:$0xff]  ;;  %v255_v12 = vld [vmem:[#allocation5 + $0x20] sm:$0xff]  ;;  %v254_v13 = vld [vmem:[#allocation5 + $0x18] sm:$0xff]  ;;  %s1097_s14 = smov [#allocation7]  }
  0x4f   : > { %758 = vmatprep.subr.mxu0 %v264_v2  ;;  %812 = vmatprep.subr.mxu1 %v264_v2  ;;  %v253_v14 = vld [vmem:[#allocation5 + $0x10] sm:$0xff]  ;;  %v252_v15 = vld [vmem:[#allocation5 + $0x8] sm:$0xff]  ;;  %v251_v16 = vld [vmem:[#allocation5] sm:$0xff]  ;;  %p969_p7 = pnand %p968_p3, %p1469_p10  ;;  %s971_s24 = sshll.u32 %s1097_s14, 4  ;;  %s972_s24 = int_to_ptr.vmem [resolvable:$false] %s971_s24 }
  0x50   : > { %759 = vmatpush3.msra.mxu0 %v264_v2  ;;  %828 = vmatpush3.msra.mxu1 %v264_v2  ;;  %v268_v17 = vld [vmem:[%s1256_s29 + $0x8] sm:$0xff]  ;;  %v269_v18 = vld [vmem:[%s1256_s29 + $0x10] sm:$0xff]  ;;  %v275_v19 = vld [vmem:[%s1256_s29 + $0x40] sm:$0xff]  ;;  %s973_s11 = scalar_lea.vmem %s972_s24, 4096  ;;  %p974_p11 = scmp.lt.s32.totalorder %s1321_s5, %s972_s24 }
  0x51   : > { %760 = vmatprep.subr.mxu0 %v263_v3  ;;  %813 = vmatprep.subr.mxu1 %v263_v3  ;;  %v276_v20 = vld [vmem:[%s1256_s29 + $0x48] sm:$0xff]  ;;  %v277_v21 = vld [vmem:[%s1256_s29 + $0x50] sm:$0xff]  ;;  %v270_v22 = vld [vmem:[%s1256_s29 + $0x18] sm:$0xff]  ;;  %p970_p9 = pneg %p969_p7  ;;  %p975_p12 = scmp.lt.s32.totalorder %s973_s11, %s967_s13 }
  0x52   : > { %761 = vmatpush3.msra.mxu0 %v263_v3  ;;  %829 = vmatpush3.msra.mxu1 %v263_v3  ;;  %v271_v23 = vld [vmem:[%s1256_s29 + $0x20] sm:$0xff]  ;;  %v278_v24 = vld [vmem:[%s1256_s29 + $0x58] sm:$0xff]  ;;  %v272_v26 = vld [vmem:[%s1256_s29 + $0x28] sm:$0xff] }
  0x53   : > { %762 = vmatprep.subr.mxu0 %v262_v4  ;;  %814 = vmatprep.subr.mxu1 %v262_v4  ;;  %v279_v25 = vld [vmem:[%s1256_s29 + $0x60] sm:$0xff]  ;;  %v273_v27 = vld [vmem:[%s1256_s29 + $0x30] sm:$0xff]  ;;  %v280_v28 = vld [vmem:[%s1256_s29 + $0x68] sm:$0xff]  ;;  %p976_p13 = por %p975_p12, %p974_p11 }
  0x54   : > { %763 = vmatpush3.msra.mxu0 %v262_v4  ;;  %830 = vmatpush3.msra.mxu1 %v262_v4  ;;  %v281_v29 = vld [vmem:[%s1256_s29 + $0x70] sm:$0xff]  ;;  %v274_v30 = vld [vmem:[%s1256_s29 + $0x38] sm:$0xff] }
  0x55   : > { %764 = vmatprep.subr.mxu0 %v261_v5  ;;  %815 = vmatprep.subr.mxu1 %v261_v5  ;;  %v282_v31 = vld [vmem:[%s1256_s29 + $0x78] sm:$0xff]  ;;  %p977_p0 = pnand %p976_p13, %p970_p9 }
  0x56   : > { %765 = vmatpush3.msra.mxu0 %v261_v5  ;;  %831 = vmatpush3.msra.mxu1 %v261_v5 }
  0x57   : > { %766 = vmatprep.subr.mxu0 %v260_v6  ;;  %816 = vmatprep.subr.mxu1 %v260_v6 }
  0x58   : > { %767 = vmatpush3.msra.mxu0 %v260_v6  ;;  %832 = vmatpush3.msra.mxu1 %v260_v6 }
  0x59   : > { %768 = vmatprep.subr.mxu0 %v259_v7  ;;  %817 = vmatprep.subr.mxu1 %v259_v7 }
  0x5a   : > { %769 = vmatpush3.msra.mxu0 %v259_v7  ;;  %833 = vmatpush3.msra.mxu1 %v259_v7 }
  0x5b   : > { %770 = vmatprep.subr.mxu0 %v258_v8  ;;  %818 = vmatprep.subr.mxu1 %v258_v8 }
  0x5c   : > { %771 = vmatpush3.msra.mxu0 %v258_v8  ;;  %834 = vmatpush3.msra.mxu1 %v258_v8 }
  0x5d   : > { %772 = vmatprep.subr.mxu0 %v257_v9  ;;  %786 = vmatprep.mubr.f32.mxu0 %v267_v10 }
  0x5e   : > { %773 = vmatpush3.msra.mxu0 %v257_v9  ;;  %819 = vmatprep.subr.mxu1 %v257_v9 }
  0x5f   : > { %774 = vmatprep.subr.mxu0 %v256_v11  ;;  %835 = vmatpush3.msra.mxu1 %v257_v9 }
  0x60   : > { %775 = vmatpush3.msra.mxu0 %v256_v11  ;;  %820 = vmatprep.subr.mxu1 %v256_v11 }
  0x61   : > { %776 = vmatprep.subr.mxu0 %v255_v12  ;;  %836 = vmatpush3.msra.mxu1 %v256_v11 }
  0x62   : > { %777 = vmatpush3.msra.mxu0 %v255_v12  ;;  %821 = vmatprep.subr.mxu1 %v255_v12 }
  0x63   : > { %778 = vmatprep.subr.mxu0 %v254_v13  ;;  %837 = vmatpush3.msra.mxu1 %v255_v12 }
  0x64   : > { %779 = vmatpush3.msra.mxu0 %v254_v13  ;;  %822 = vmatprep.subr.mxu1 %v254_v13 }
  0x65   : > { %780 = vmatprep.subr.mxu0 %v253_v14  ;;  %838 = vmatpush3.msra.mxu1 %v254_v13 }
  0x66   : > { %781 = vmatpush3.msra.mxu0 %v253_v14  ;;  %823 = vmatprep.subr.mxu1 %v253_v14 }
  0x67   : > { %782 = vmatprep.subr.mxu0 %v252_v15  ;;  %839 = vmatpush3.msra.mxu1 %v253_v14 }
  0x68   : > { %783 = vmatpush3.msra.mxu0 %v252_v15  ;;  %824 = vmatprep.subr.mxu1 %v252_v15 }
  0x69   : > { %784 = vmatprep.subr.mxu0 %v251_v16  ;;  %840 = vmatpush3.msra.mxu1 %v252_v15 }
  0x6a   : > { %785 = vmatpush3.msra.mxu0 %v251_v16  ;;  %825 = vmatprep.subr.mxu1 %v251_v16 }
  0x6b   : > { %787 = vmatmul.mubr.f32.vlgmr.msra.gmra.mxu0 %v268_v17  ;;  %841 = vmatpush3.msra.mxu1 %v251_v16 }
  0x6c   : > { %789 = vmatprep.mubr.f32.mxu0 %v269_v18  ;;  %798 = vmatprep.mubr.f32.mxu1 %v275_v19 }
  0x6d   : > { %799 = vmatmul.mubr.f32.vlgmr.msra.gmra.mxu1 %v276_v20 }
  0x6e   : > { %801 = vmatprep.mubr.f32.mxu1 %v277_v21 }
  0x6f   : > { %790 = vmatmul.mubr.f32.gmra.mxu0 %v270_v22 }
  0x70   : > { %792 = vmatprep.mubr.f32.mxu0 %v271_v23 }
  0x71   : > { %802 = vmatmul.mubr.f32.gmra.mxu1 %v278_v24 }
  0x72   : > { %804 = vmatprep.mubr.f32.mxu1 %v279_v25 }
  0x73   : > { %793 = vmatmul.mubr.f32.gmra.mxu0 %v272_v26 }
  0x74   : > { %795 = vmatprep.mubr.f32.mxu0 %v273_v27 }
  0x75   : > { %805 = vmatmul.mubr.f32.gmra.mxu1 %v280_v28 }
  0x76   : > { %807 = vmatprep.mubr.f32.mxu1 %v281_v29 }
  0x77   : > { %796 = vmatmul.mubr.f32.gmra.mxu0 %v274_v30 }
  0x79   : > { %808 = vmatmul.mubr.f32.gmra.mxu1 %v282_v31 }
 0x12b   : > { %v788_v32 = vpop.f32.mrf.mxu0 }
 0x12c   : > { %429 = vst [vmem:[%s1284_s21 + $0x8] sm:$0xff] %v788_v32  ;;  %v467_v38 = vmul.f32 %v788_v32, %v788_v32 }
 0x12d   : > { %v349_v33 = vpop.f32.mrf.mxu0  ;;  %v1287_v34 = vpop.f32.mrf.mxu1 }
 0x12e   : > { %428 = vst [vmem:[%s1284_s21] sm:$0xff] %v349_v33  ;;  %v466_v35 = vmul.f32 %v349_v33, %v349_v33  ;;  %437 = vst [vmem:[%s1284_s21 + $0x48] sm:$0xff] %v1287_v34  ;;  %v444_v39 = vadd.f32 %v788_v32, %v349_v33 }
 0x12f   : > { %v791_v36 = vpop.f32.mrf.mxu0  ;;  %v1292_v37 = vpop.f32.mrf.mxu1 }
 0x130   : > { %431 = vst [vmem:[%s1284_s21 + $0x18] sm:$0xff] %v791_v36  ;;  %436 = vst [vmem:[%s1284_s21 + $0x40] sm:$0xff] %v1292_v37  ;;  %v482_v42 = vadd.f32 %v467_v38, %v466_v35  ;;  %v469_v47 = vmul.f32 %v791_v36, %v791_v36 }
 0x131   : > { %v359_v40 = vpop.f32.mrf.mxu0  ;;  %v1297_v41 = vpop.f32.mrf.mxu1 }
 0x132   : > { %430 = vst [vmem:[%s1284_s21 + $0x10] sm:$0xff] %v359_v40  ;;  %v445_v43 = vadd.f32 %v444_v39, %v359_v40  ;;  %v468_v44 = vmul.f32 %v359_v40, %v359_v40  ;;  %439 = vst [vmem:[%s1284_s21 + $0x58] sm:$0xff] %v1297_v41 }
 0x133   : > { %v794_v45 = vpop.f32.mrf.mxu0  ;;  %v1302_v46 = vpop.f32.mrf.mxu1 }
 0x134   : > { %v483_v48 = vadd.f32 %v482_v42, %v468_v44  ;;  %433 = vst [vmem:[%s1284_s21 + $0x28] sm:$0xff] %v794_v45  ;;  %v446_v49 = vadd.f32 %v791_v36, %v445_v43  ;;  %438 = vst [vmem:[%s1284_s21 + $0x50] sm:$0xff] %v1302_v46  ;;  %v471_v57 = vmul.f32 %v794_v45, %v794_v45 }
 0x135   : > { %v369_v50 = vpop.f32.mrf.mxu0  ;;  %v1307_v51 = vpop.f32.mrf.mxu1 }
 0x136   : > { %432 = vst [vmem:[%s1284_s21 + $0x20] sm:$0xff] %v369_v50  ;;  %v447_v52 = vadd.f32 %v446_v49, %v369_v50  ;;  %v470_v53 = vmul.f32 %v369_v50, %v369_v50  ;;  %v484_v54 = vadd.f32 %v483_v48, %v469_v47  ;;  %441 = vst [vmem:[%s1284_s21 + $0x68] sm:$0xff] %v1307_v51 }
 0x137   : > { %v797_v55 = vpop.f32.mrf.mxu0  ;;  %v409_v56 = vpop.f32.mrf.mxu1 }
 0x138   : > { %v485_v58 = vadd.f32 %v484_v54, %v470_v53  ;;  %435 = vst [vmem:[%s1284_s21 + $0x38] sm:$0xff] %v797_v55  ;;  %v448_v59 = vadd.f32 %v794_v45, %v447_v52  ;;  %440 = vst [vmem:[%s1284_s21 + $0x60] sm:$0xff] %v409_v56  ;;  %v473_v2 = vmul.f32 %v797_v55, %v797_v55 }
 0x139   : > { %v379_v60 = vpop.f32.mrf.mxu0  ;;  %v809_v61 = vpop.f32.mrf.mxu1 }
 0x13a   : > { %434 = vst [vmem:[%s1284_s21 + $0x30] sm:$0xff] %v379_v60  ;;  %v449_v62 = vadd.f32 %v448_v59, %v379_v60  ;;  %v472_v63 = vmul.f32 %v379_v60, %v379_v60  ;;  %v486_v0 = vadd.f32 %v485_v58, %v471_v57  ;;  %443 = vst [vmem:[%s1284_s21 + $0x78] sm:$0xff] %v809_v61 }
 0x13b   : > { %v419_v1 = vpop.f32.mrf.mxu1 }
 0x13c   : > { %v450_v3 = vadd.f32 %v797_v55, %v449_v62  ;;  %v487_v4 = vadd.f32 %v486_v0, %v472_v63  ;;  %442 = vst [vmem:[%s1284_s21 + $0x70] sm:$0xff] %v419_v1 }
 0x13d   : > { %980 = shalt.err (!%p977_p0)
}
 0x13e   : > { %s981_s25 = scalar_lea.hbm %s1319_s28, 2048  ;;  %s985_s12 = scalar_lea.hbm %s1450_s2, 8192 }
 0x13f   : > { %p982_p5 = scmp.ne.s32.totalorder %s1319_s28, %s981_s25  ;;  %p986_p4 = scmp.lt.s32.totalorder %s1319_s28, %s1450_s2 }
 0x140   : > { %p987_p6 = scmp.lt.s32.totalorder %s985_s12, %s981_s25 }
 0x141   : > { %p983_p2 = pnand %p982_p5, %p1469_p10 }
 0x142   : > { %p988_p8 = por %p987_p6, %p986_p4 }
 0x143   : > { %p984_p1 = pneg %p983_p2 }
 0x145   : > { %p989_p3 = pnand %p988_p8, %p984_p1 }
 0x147   : > { %992 = shalt.err (!%p989_p3)
}
 0x148   : > { %s1098_s23 = smov 128   ;;  %s1099_s6 = smov 8   ;;  %v488_v5 = vadd.f32 %v487_v4, %v473_v2  ;;  %v451_v6 = vadd.f32 %v450_v3, %v1292_v37  ;;  %v474_v7 = vmul.f32 %v1292_v37, %v1292_v37  ;;  %v475_v8 = vmul.f32 %v1287_v34, %v1287_v34 }
 0x149   : > { %848 = dma.vmem_to_hbm [thread:$0]  (%p1469_p10), %s1321_s5, 2048, %s1319_s28, %s505_s30, %s1098_s23, %s1098_s23, %s1099_s6   ;;  %v476_v12 = vmul.f32 %v1302_v46, %v1302_v46  ;;  %v477_v14 = vmul.f32 %v1297_v41, %v1297_v41  ;;  %v478_v18 = vmul.f32 %v409_v56, %v409_v56  ;;  %v479_v20 = vmul.f32 %v1307_v51, %v1307_v51 }
 0x14a   : > { %v489_v9 = vadd.f32 %v488_v5, %v474_v7  ;;  %v452_v10 = vadd.f32 %v1287_v34, %v451_v6  ;;  %v480_v24 = vmul.f32 %v419_v1, %v419_v1  ;;  %v481_v26 = vmul.f32 %v809_v61, %v809_v61  ;;  %s709_s5 = sshll.u32 %s1250_s7, 3  ;;  %s509_s26 = sand.u32 1, %s1148_s19  }
 0x14b   : > { %s716_s28 = sshll.u32 %s1148_s19, 7  ;;  %s241_s30 = scalar_lea.vmem [#allocation8], %s709_s5 }
 0x14c   : > { %v453_v11 = vadd.f32 %v452_v10, %v1302_v46  ;;  %v490_v13 = vadd.f32 %v489_v9, %v475_v8  ;;  %s544_s13 = sshll.u32 %s241_s30, 4  ;;  %s1367_s14 = scalar_lea.vmem [#allocation10], %s709_s5  ;;  %s1375_s13 = int_to_ptr.vmem [resolvable:$true] %s544_s13 }
 0x14d   : > { %s557_s24 = sshll.u32 %s1367_s14, 4  ;;  %s1373_s25 = scalar_lea.hbm %s1451_s3, %s716_s28  ;;  %s1382_s24 = int_to_ptr.vmem [resolvable:$true] %s557_s24 }
 0x14e   : > { %v491_v15 = vadd.f32 %v490_v13, %v476_v12  ;;  %v454_v16 = vadd.f32 %v1297_v41, %v453_v11  ;;  %s1380_s20 = scalar_lea.hbm %s1452_s4, %s716_s28  ;;  %s1384_s12 = scalar_lea.sflag [#allocation9], %s509_s26 }
 0x14f   : > { %s993_s29 = scalar_lea.vmem %s1375_s13, 128  ;;  %s1100_s21 = smov [#allocation8]  }
 0x150   : > { %v455_v17 = vadd.f32 %v454_v16, %v409_v56  ;;  %v492_v19 = vadd.f32 %v491_v15, %v477_v14  ;;  %p994_p7 = scmp.ne.s32.totalorder %s1375_s13, %s993_s29  ;;  %s997_s23 = sshll.u32 %s1100_s21, 4  ;;  %s998_s23 = int_to_ptr.vmem [resolvable:$false] %s997_s23 }
 0x151   : > { %s999_s6 = scalar_lea.vmem %s998_s23, 256  ;;  %p1000_p12 = scmp.lt.s32.totalorder %s1375_s13, %s998_s23 }
 0x152   : > { %v493_v21 = vadd.f32 %v492_v19, %v478_v18  ;;  %v456_v22 = vadd.f32 %v1307_v51, %v455_v17  ;;  %p995_p9 = pnand %p994_p7, %p1469_p10  ;;  %p1001_p13 = scmp.lt.s32.totalorder %s999_s6, %s993_s29 }
 0x154   : > { %v457_v23 = vadd.f32 %v456_v22, %v419_v1  ;;  %v494_v25 = vadd.f32 %v493_v21, %v479_v20  ;;  %p996_p11 = pneg %p995_p9  ;;  %p1002_p0 = por %p1001_p13, %p1000_p12 }
 0x156   : > { %v458_v27 = vadd.f32 %v809_v61, %v457_v23  ;;  %v495_v28 = vadd.f32 %v494_v25, %v480_v24  ;;  %p1003_p5 = pnand %p1002_p0, %p996_p11 }
 0x158   : > { %v459_v29 = vrot.slane %v458_v27, 4  ;;  %v496_v30 = vadd.f32 %v495_v28, %v481_v26 }
 0x15a   : > { %v460_v31 = vadd.f32 %v459_v29, %v458_v27  ;;  %v497_v32 = vrot.slane %v496_v30, 4 }
 0x15c   : > { %v461_v33 = vrot.slane %v460_v31, 2  ;;  %v498_v34 = vadd.f32 %v497_v32, %v496_v30 }
 0x15e   : > { %v462_v35 = vadd.f32 %v461_v33, %v460_v31  ;;  %v499_v36 = vrot.slane %v498_v34, 2 }
 0x160   : > { %v463_v37 = vrot.slane %v462_v35, 1  ;;  %v500_v38 = vadd.f32 %v499_v36, %v498_v34 }
 0x162   : > { %v464_v39 = vadd.f32 %v463_v37, %v462_v35  ;;  %v501_v40 = vrot.slane %v500_v38, 1 }
 0x164   : > { %v502_v41 = vadd.f32 %v501_v40, %v500_v38  ;;  %465 = vst [vmem:[%s241_s30] sm:$0xff] %v464_v39 }
 0x165   : > { %1006 = shalt.err (!%p1003_p5)
}
 0x166   : > { %s1007_s5 = scalar_lea.hbm %s1373_s25, 128  ;;  %s1011_s30 = scalar_lea.hbm %s1451_s3, 512 }
 0x167   : > { %p1008_p2 = scmp.ne.s32.totalorder %s1373_s25, %s1007_s5  ;;  %p1012_p6 = scmp.lt.s32.totalorder %s1373_s25, %s1451_s3 }
 0x168   : > { %p1013_p8 = scmp.lt.s32.totalorder %s1011_s30, %s1007_s5 }
 0x169   : > { %p1009_p1 = pnand %p1008_p2, %p1469_p10 }
 0x16a   : > { %p1014_p3 = por %p1013_p8, %p1012_p6 }
 0x16b   : > { %p1010_p4 = pneg %p1009_p1 }
 0x16d   : > { %p1015_p7 = pnand %p1014_p3, %p1010_p4 }
 0x16f   : > { %1018 = shalt.err (!%p1015_p7)
}
 0x170   : > { %849 = dma.vmem_to_hbm [thread:$0]  (%p1469_p10), %s1375_s13, 128, %s1373_s25, %s1384_s12   ;;  %503 = vst [vmem:[%s1367_s14] sm:$0xff] %v502_v41 }
 0x171   : > { %s1019_s19 = scalar_lea.vmem %s1382_s24, 128  ;;  %s1101_s8 = smov [#allocation10]  }
 0x172   : > { %p1020_p9 = scmp.ne.s32.totalorder %s1382_s24, %s1019_s19  ;;  %s1023_s29 = sshll.u32 %s1101_s8, 4  ;;  %s1024_s29 = int_to_ptr.vmem [resolvable:$false] %s1023_s29 }
 0x173   : > { %s1025_s21 = scalar_lea.vmem %s1024_s29, 256  ;;  %p1026_p13 = scmp.lt.s32.totalorder %s1382_s24, %s1024_s29 }
 0x174   : > { %p1021_p11 = pnand %p1020_p9, %p1469_p10  ;;  %p1027_p0 = scmp.lt.s32.totalorder %s1025_s21, %s1019_s19 }
 0x176   : > { %p1022_p12 = pneg %p1021_p11  ;;  %p1028_p5 = por %p1027_p0, %p1026_p13 }
 0x178   : > { %p1029_p2 = pnand %p1028_p5, %p1022_p12 }
 0x17a   : > { %1032 = shalt.err (!%p1029_p2)
}
 0x17b   : > { %s1033_s13 = scalar_lea.hbm %s1380_s20, 128  ;;  %s1037_s23 = scalar_lea.hbm %s1452_s4, 512 }
 0x17c   : > { %p1034_p1 = scmp.ne.s32.totalorder %s1380_s20, %s1033_s13  ;;  %p1038_p8 = scmp.lt.s32.totalorder %s1380_s20, %s1452_s4 }
 0x17d   : > { %p1039_p3 = scmp.lt.s32.totalorder %s1037_s23, %s1033_s13 }
 0x17e   : > { %p1035_p4 = pnand %p1034_p1, %p1469_p10 }
 0x17f   : > { %p1040_p7 = por %p1039_p3, %p1038_p8 }
 0x180   : > { %p1036_p6 = pneg %p1035_p4 }
 0x182   : > { %p1041_p9 = pnand %p1040_p7, %p1036_p6 }
 0x184   : > { %1044 = shalt.err (!%p1041_p9)
}
 0x185   : > { %850 = dma.vmem_to_hbm [thread:$0]  (%p1469_p10), %s1382_s24, 128, %s1380_s20, %s1384_s12  }
 0x186 PF: > { %p875_p11 = scmp.ge.s32.totalorder %s1091_s18, 2  ;;  %s569_s26 = sand.u32 1, %s1079_s15  }
 0x187   : > { %p1470_p12 = scmp.ne.s32.totalorder %s1459_s22, 0  ;;  %s570_s28 = scalar_lea.sflag [#allocation4], %s569_s26 }
 0x189   : > { %p863_p13 = pnand %p875_p11, %p1470_p12 }
 0x18b   : > { %p864_p0 = pneg %p863_p13 }
 0x18d   : > { %1070 = dma.done.wait (%p864_p0), %s570_s28, 2048  }
 0x18e   : > { %1072 = vsyncadd (%p864_p0), %s570_s28, 4294965248  ;;  %s1471_s30 = sadd.s32 4294967294, %s1091_s18  }
 0x18f   : > { %s578_s7 = sand.u32 1, %s1471_s30  }
 0x190   : > { %s579_s10 = scalar_lea.sflag [#allocation9], %s578_s7 }
 0x191   : > { %1074 = dma.done.wait (%p864_p0), %s579_s10, 256  }
 0x192   : > { %1076 = vsyncadd (%p864_p0), %s579_s10, 4294967040  ;;  %p22_p10 = scmp.ge.s32.totalorder %s1182_s27, 6   ;;  %s1472_s15 = smov %s1083_s16 }
 0x193   : > { %s1473_s16 = smov %s1087_s17  ;;  %s1474_s17 = smov %s1202_s9 }
 0x194   : > { %s1475_s18 = smov %s1182_s27  ;;  %24 = sbr.rel (!%p22_p10) target bundleno = 8 (0x8), region = 109 }
 0x199   :  { %593 = vsyncpa [#allocation3], 1 }
 0x19a   :  { %595 = vsyncpa [#allocation3 + $0x1], 1 }
 0x19b   :  { %596 = vsyncpa [#allocation6], 1 }
 0x19c   :  { %597 = vsyncpa [#allocation4], 1 }
 0x19d   :  { %599 = vsyncpa [#allocation4 + $0x1], 1 }
 0x19e   :  { %600 = vsyncpa [#allocation9], 1 }
 0x19f   :  { %602 = vsyncpa [#allocation9 + $0x1], 1 }

</bundles_post_ra>
